<compile_context>
chip_gen: v6e
topology: v6e:2x2x1
jax: 0.10.0
libtpu: 0.0.40
codegen_flags: <defaults>
</compile_context>

<pallas_src>
import numpy as np
import jax
import jax.numpy as jnp
from jax import lax
from jax.experimental import pallas as pl
from jax.experimental.pallas import tpu as pltpu

N_BLOCKS = 4   # the module hard-codes four chained conv+pool blocks
_PAD = 128     # lane-aligned padding width used for all shifted-window slicing


def _make_crp_kernel(H, W, C, n_blocks, imgs_per_step):
    HW = H * W
    assert _PAD >= 2 * W and _PAD >= W + 1

    def kernel(x_ref, w_ref, o_ref):
        # x_ref : (imgs, C, H*W) f32   lane-dense input rows
        # w_ref : (n_blocks, C, 9*C) bf16 ; w_ref[b][co, (ky*3+kx)*C + ci] = w_b[ky, kx, ci, co]
        # o_ref : (imgs, C, H*W) f32   lane-dense output rows

        # Column-validity masks, computed once (w = flat_index mod W).
        wcol = lax.broadcasted_iota(jnp.int32, (C, HW), 1) % W
        m_l1, m_l2 = wcol >= 1, wcol >= 2            # neighbour at w-1 / w-2 exists
        m_r1, m_r2 = wcol <= W - 2, wcol <= W - 3    # neighbour at w+1 / w+2 exists

        zpad_bf = jnp.zeros((C, _PAD), jnp.bfloat16)
        ninf = jnp.full((C, _PAD), -jnp.inf, jnp.float32)

        def conv3x3(path, w_i):
            """'SAME' 3x3 conv, no bias: one MXU matmul with all 9 taps on the K axis."""
            pb = path.astype(jnp.bfloat16)                         # cast once per stage (item 5)
            ap = jnp.concatenate([zpad_bf, pb, zpad_bf], axis=1)   # (C, 2*_PAD + HW)
            taps = []
            for ky in range(3):
                for kx in range(3):
                    s = _PAD + (ky - 1) * W + (kx - 1)
                    t = ap[:, s:s + HW]                            # activation shifted by (ky,kx)
                    if kx == 0:                                    # mask row-wrap at left edge
                        t = jnp.where(m_l1, t, jnp.zeros_like(t))
                    elif kx == 2:                                  # mask row-wrap at right edge
                        t = jnp.where(m_r1, t, jnp.zeros_like(t))
                    taps.append(t)
            rhs = jnp.concatenate(taps, axis=0)                    # (9C, HW) bf16 flat im2col
            return jnp.dot(w_i, rhs, preferred_element_type=jnp.float32)   # (C, HW) f32

        def maxpool5x5(y):
            """5x5, stride 1, pad 2 (-inf) max pool, separable: columns then rows."""
            yp = jnp.concatenate([ninf, y, ninf], axis=1)
            cm = yp[:, _PAD:_PAD + HW]
            cm = jnp.maximum(cm, jnp.where(m_l1, yp[:, _PAD - 1:_PAD - 1 + HW], -jnp.inf))
            cm = jnp.maximum(cm, jnp.where(m_l2, yp[:, _PAD - 2:_PAD - 2 + HW], -jnp.inf))
            cm = jnp.maximum(cm, jnp.where(m_r1, yp[:, _PAD + 1:_PAD + 1 + HW], -jnp.inf))
            cm = jnp.maximum(cm, jnp.where(m_r2, yp[:, _PAD + 2:_PAD + 2 + HW], -jnp.inf))
            cp = jnp.concatenate([ninf, cm, ninf], axis=1)
            out = cp[:, _PAD:_PAD + HW]
            for dy in (-2, -1, 1, 2):                              # row shifts never wrap columns
                out = jnp.maximum(out, cp[:, _PAD + dy * W:_PAD + dy * W + HW])
            return out

        def stage(i, carry):
            acc, path = carry
            y = conv3x3(path, w_ref[i])                            # per-stage weights, dyn index
            path = maxpool5x5(y)
            return acc + path, path                                # x = x + path

        for j in range(imgs_per_step):
            x0 = jnp.maximum(x_ref[j], 0.0)                        # leading ReLU, (C, HW) f32
            acc, _ = lax.fori_loop(0, n_blocks, stage, (x0, x0))
            o_ref[j] = acc                                         # dense 256-lane store

    return kernel


def chained_residual_pool_improved(x_nchw, weights, images_per_block=1):
    """x_nchw: (N, C, H, W) f32; weights: list of 4 HWIO (3, 3, C, C) conv kernels (bias=False).

    images_per_block > 1 folds several images into one grid step (amortizes grid overhead on
    single-TensorCore v5e/v6e); the default keeps grid=(N,) "parallel" for v7x's two cores.
    """
    N, C, H, W = x_nchw.shape
    nb = len(weights)
    assert N % images_per_block == 0
    HW = H * W
    ips = images_per_block

    x = x_nchw.reshape(N, C, HW)                     # lane-dense rows; no transpose needed
    # Pack weights per block with all 9 taps on the contraction axis:
    #   w_packed[b][co, (ky*3+kx)*C + ci] = w_b[ky, kx, ci, co]
    w_packed = jnp.stack(
        [jnp.transpose(w.reshape(9, C, C), (2, 0, 1)).reshape(C, 9 * C) for w in weights]
    ).astype(jnp.bfloat16)                           # (nb, C, 9C)

    out = pl.pallas_call(
        _make_crp_kernel(H, W, C, nb, ips),
        out_shape=jax.ShapeDtypeStruct((N, C, HW), jnp.float32),
        grid=(N // ips,),
        in_specs=[
            pl.BlockSpec((ips, C, HW), lambda n: (n, 0, 0)),
            pl.BlockSpec((nb, C, 9 * C), lambda n: (0, 0, 0)),
        ],
        out_specs=pl.BlockSpec((ips, C, HW), lambda n: (n, 0, 0)),
        compiler_params=pltpu.CompilerParams(dimension_semantics=("parallel",)),
    )(x, w_packed)
    return out.reshape(N, C, H, W)


# ------------------------- pure-JAX reference (f32) -------------------------

def chained_residual_pool_improved_ref(x_nchw, weights):
    x = jnp.transpose(x_nchw, (0, 2, 3, 1))
    x = jnp.maximum(x, 0.0)
    path = x
    for w in weights:
        y = lax.conv_general_dilated(
            path, w, window_strides=(1, 1), padding="SAME",
            dimension_numbers=("NHWC", "HWIO", "NHWC"),
            precision=lax.Precision.HIGHEST)
        path = lax.reduce_window(
            y, -jnp.inf, lax.max,
            window_dimensions=(1, 5, 5, 1), window_strides=(1, 1, 1, 1),
            padding=((0, 0), (2, 2), (2, 2), (0, 0)))
        x = x + path
    return jnp.transpose(x, (0, 3, 1, 2))


# ------------------------- main -------------------------

if __name__ == "__main__":
    key = jax.random.PRNGKey(0)
    N, C, H, W = 2, 32, 16, 16                 # feats = 32
    k_x, *k_w = jax.random.split(key, 1 + N_BLOCKS)

    x = jax.random.normal(k_x, (N, C, H, W), dtype=jnp.float32)
    weights = [0.03 * jax.random.normal(k, (3, 3, C, C), jnp.float32) for k in k_w]

    ref = chained_residual_pool_improved_ref(x, weights)

    # grid=(N,) "parallel": one image per grid step (on v7x: one image per TensorCore).
    out = jax.jit(chained_residual_pool_improved)(x, weights)
    jax.block_until_ready(out)
    assert out.shape == (N, C, H, W), out.shape
    # bf16 MXU operands with f32 accumulation vs. the f32 HIGHEST reference.
    np.testing.assert_allclose(np.asarray(out), np.asarray(ref), rtol=5e-2, atol=5e-2)

    # Whole batch folded into a single grid step (v5e/v6e-style batching, review item 7).
    out2 = jax.jit(
        lambda a, ws: chained_residual_pool_improved(a, ws, images_per_block=N)
    )(x, weights)
    jax.block_until_ready(out2)
    np.testing.assert_allclose(np.asarray(out2), np.asarray(ref), rtol=5e-2, atol=5e-2)

    print("KERNEL_OK")
</pallas_src>

<mosaic_0001>
module attributes {stable_mosaic.version = 11 : i64} {
  func.func @kernel(%arg0: i32, %arg1: memref<1x32x256xf32, #tpu.memory_space<vmem>>, %arg2: memref<4x32x288xbf16, #tpu.memory_space<vmem>>, %arg3: memref<1x32x256xf32, #tpu.memory_space<vmem>>) attributes {dimension_semantics = [#tpu.dimension_semantics<parallel>], iteration_bounds = array<i64: 2>, scalar_prefetch = 0 : i64, scratch_operands = 0 : i64, tpu.core_type = #tpu.core_type<tc>, window_params = [{transform_indices = @transform_0, window_bounds = array<i64: 1, 32, 256>}, {pipeline_mode = #tpu.pipeline_mode<synchronous>, transform_indices = @transform_1, window_bounds = array<i64: 4, 32, 288>}, {transform_indices = @transform_2, window_bounds = array<i64: 1, 32, 256>}]} {
    %0 = tpu.iota {dimensions = array<i32: 1>} : vector<32x256xi32>
    %c16_i32 = arith.constant 16 : i32
    %c0_i32 = arith.constant 0 : i32
    %1 = arith.cmpi eq, %c16_i32, %c0_i32 : i32
    %c1_i32 = arith.constant 1 : i32
    %2 = arith.select %1, %c1_i32, %c16_i32 : i32
    %3 = vector.broadcast %2 : i32 to vector<32x256xi32>
    %4 = arith.remsi %0, %3 : vector<32x256xi32>
    %c0_i32_0 = arith.constant 0 : i32
    %5 = vector.broadcast %c0_i32_0 : i32 to vector<32x256xi32>
    %6 = arith.cmpi ne, %4, %5 : vector<32x256xi32>
    %c0_i32_1 = arith.constant 0 : i32
    %7 = vector.broadcast %c0_i32_1 : i32 to vector<32x256xi32>
    %8 = arith.cmpi slt, %4, %7 : vector<32x256xi32>
    %c0_i32_2 = arith.constant 0 : i32
    %9 = arith.cmpi slt, %2, %c0_i32_2 : i32
    %10 = vector.broadcast %9 : i1 to vector<32x256xi1>
    %11 = vector.broadcast %10 : vector<32x256xi1> to vector<32x256xi1>
    %12 = arith.xori %8, %11 : vector<32x256xi1>
    %13 = arith.andi %12, %6 : vector<32x256xi1>
    %14 = vector.broadcast %2 : i32 to vector<32x256xi32>
    %15 = arith.addi %4, %14 : vector<32x256xi32>
    %16 = arith.select %13, %15, %4 : vector<32x256xi1>, vector<32x256xi32>
    %c1_i32_3 = arith.constant 1 : i32
    %17 = vector.broadcast %c1_i32_3 : i32 to vector<32x256xi32>
    %18 = arith.cmpi sge, %16, %17 : vector<32x256xi32>
    %c2_i32 = arith.constant 2 : i32
    %19 = vector.broadcast %c2_i32 : i32 to vector<32x256xi32>
    %20 = arith.cmpi sge, %16, %19 : vector<32x256xi32>
    %c14_i32 = arith.constant 14 : i32
    %21 = vector.broadcast %c14_i32 : i32 to vector<32x256xi32>
    %22 = arith.cmpi sle, %16, %21 : vector<32x256xi32>
    %c13_i32 = arith.constant 13 : i32
    %23 = vector.broadcast %c13_i32 : i32 to vector<32x256xi32>
    %24 = arith.cmpi sle, %16, %23 : vector<32x256xi32>
    %cst = arith.constant 0.000000e+00 : bf16
    %25 = vector.broadcast %cst : bf16 to vector<32x128xbf16>
    %cst_4 = arith.constant 0xFF800000 : f32
    %26 = vector.broadcast %cst_4 : f32 to vector<32x128xf32>
    %c0 = arith.constant 0 : index
    %c0_5 = arith.constant 0 : index
    %c0_6 = arith.constant 0 : index
    %27 = vector.load %arg1[%c0, %c0_5, %c0_6] : memref<1x32x256xf32, #tpu.memory_space<vmem>>, vector<1x32x256xf32>
    %28 = vector.shape_cast %27 : vector<1x32x256xf32> to vector<32x256xf32>
    %cst_7 = arith.constant 0.000000e+00 : f32
    %29 = vector.broadcast %cst_7 : f32 to vector<32x256xf32>
    %30 = arith.maximumf %28, %29 : vector<32x256xf32>
    %c0_i32_8 = arith.constant 0 : i32
    %c4_i32 = arith.constant 4 : i32
    %31 = arith.addi %c0_i32_8, %c4_i32 : i32
    %c1_i32_9 = arith.constant 1 : i32
    %32:2 = scf.for %arg4 = %c0_i32_8 to %31 step %c1_i32_9 iter_args(%arg5 = %30, %arg6 = %30) -> (vector<32x256xf32>, vector<32x256xf32>)  : i32 {
      %36 = arith.index_cast %arg4 : i32 to index
      %c0_14 = arith.constant 0 : index
      %c0_15 = arith.constant 0 : index
      %37 = vector.load %arg2[%36, %c0_14, %c0_15] : memref<4x32x288xbf16, #tpu.memory_space<vmem>>, vector<1x32x288xbf16>
      %38 = vector.shape_cast %37 : vector<1x32x288xbf16> to vector<32x288xbf16>
      %39 = arith.truncf %arg6 : vector<32x256xf32> to vector<32x256xbf16>
      %40 = tpu.concatenate %25, %39, %25 in 1 : vector<32x128xbf16>, vector<32x256xbf16>, vector<32x128xbf16> -> vector<32x512xbf16>
      %41 = vector.extract_strided_slice %40 {offsets = [0, 111], sizes = [32, 256], strides = [1, 1]} : vector<32x512xbf16> to vector<32x256xbf16>
      %cst_16 = arith.constant 0.000000e+00 : bf16
      %42 = vector.broadcast %cst_16 : bf16 to vector<32x256xbf16>
      %43 = arith.select %18, %41, %42 : vector<32x256xi1>, vector<32x256xbf16>
      %44 = vector.extract_strided_slice %40 {offsets = [0, 112], sizes = [32, 256], strides = [1, 1]} : vector<32x512xbf16> to vector<32x256xbf16>
      %45 = vector.extract_strided_slice %40 {offsets = [0, 113], sizes = [32, 256], strides = [1, 1]} : vector<32x512xbf16> to vector<32x256xbf16>
      %cst_17 = arith.constant 0.000000e+00 : bf16
      %46 = vector.broadcast %cst_17 : bf16 to vector<32x256xbf16>
      %47 = arith.select %22, %45, %46 : vector<32x256xi1>, vector<32x256xbf16>
      %48 = vector.extract_strided_slice %40 {offsets = [0, 127], sizes = [32, 256], strides = [1, 1]} : vector<32x512xbf16> to vector<32x256xbf16>
      %cst_18 = arith.constant 0.000000e+00 : bf16
      %49 = vector.broadcast %cst_18 : bf16 to vector<32x256xbf16>
      %50 = arith.select %18, %48, %49 : vector<32x256xi1>, vector<32x256xbf16>
      %51 = vector.extract_strided_slice %40 {offsets = [0, 128], sizes = [32, 256], strides = [1, 1]} : vector<32x512xbf16> to vector<32x256xbf16>
      %52 = vector.extract_strided_slice %40 {offsets = [0, 129], sizes = [32, 256], strides = [1, 1]} : vector<32x512xbf16> to vector<32x256xbf16>
      %cst_19 = arith.constant 0.000000e+00 : bf16
      %53 = vector.broadcast %cst_19 : bf16 to vector<32x256xbf16>
      %54 = arith.select %22, %52, %53 : vector<32x256xi1>, vector<32x256xbf16>
      %55 = vector.extract_strided_slice %40 {offsets = [0, 143], sizes = [32, 256], strides = [1, 1]} : vector<32x512xbf16> to vector<32x256xbf16>
      %cst_20 = arith.constant 0.000000e+00 : bf16
      %56 = vector.broadcast %cst_20 : bf16 to vector<32x256xbf16>
      %57 = arith.select %18, %55, %56 : vector<32x256xi1>, vector<32x256xbf16>
      %58 = vector.extract_strided_slice %40 {offsets = [0, 144], sizes = [32, 256], strides = [1, 1]} : vector<32x512xbf16> to vector<32x256xbf16>
      %59 = vector.extract_strided_slice %40 {offsets = [0, 145], sizes = [32, 256], strides = [1, 1]} : vector<32x512xbf16> to vector<32x256xbf16>
      %cst_21 = arith.constant 0.000000e+00 : bf16
      %60 = vector.broadcast %cst_21 : bf16 to vector<32x256xbf16>
      %61 = arith.select %22, %59, %60 : vector<32x256xi1>, vector<32x256xbf16>
      %62 = tpu.concatenate %43, %44, %47, %50, %51, %54, %57, %58, %61 in 0 : vector<32x256xbf16>, vector<32x256xbf16>, vector<32x256xbf16>, vector<32x256xbf16>, vector<32x256xbf16>, vector<32x256xbf16>, vector<32x256xbf16>, vector<32x256xbf16>, vector<32x256xbf16> -> vector<288x256xbf16>
      %cst_22 = arith.constant dense<0.000000e+00> : vector<32x256xf32>
      %63 = tpu.matmul %38, %62, %cst_22 {dimension_numbers = #tpu.dot_dimension_numbers<[1], [0], [0], [1], [0, 0, 1, 1], [], []>} : vector<32x288xbf16>, vector<288x256xbf16>, vector<32x256xf32> -> vector<32x256xf32>
      %64 = tpu.concatenate %26, %63, %26 in 1 : vector<32x128xf32>, vector<32x256xf32>, vector<32x128xf32> -> vector<32x512xf32>
      %65 = vector.extract_strided_slice %64 {offsets = [0, 128], sizes = [32, 256], strides = [1, 1]} : vector<32x512xf32> to vector<32x256xf32>
      %66 = vector.extract_strided_slice %64 {offsets = [0, 127], sizes = [32, 256], strides = [1, 1]} : vector<32x512xf32> to vector<32x256xf32>
      %cst_23 = arith.constant 0xFF800000 : f32
      %67 = vector.broadcast %cst_23 : f32 to vector<32x256xf32>
      %68 = arith.select %18, %66, %67 : vector<32x256xi1>, vector<32x256xf32>
      %69 = arith.maximumf %65, %68 : vector<32x256xf32>
      %70 = vector.extract_strided_slice %64 {offsets = [0, 126], sizes = [32, 256], strides = [1, 1]} : vector<32x512xf32> to vector<32x256xf32>
      %cst_24 = arith.constant 0xFF800000 : f32
      %71 = vector.broadcast %cst_24 : f32 to vector<32x256xf32>
      %72 = arith.select %20, %70, %71 : vector<32x256xi1>, vector<32x256xf32>
      %73 = arith.maximumf %69, %72 : vector<32x256xf32>
      %74 = vector.extract_strided_slice %64 {offsets = [0, 129], sizes = [32, 256], strides = [1, 1]} : vector<32x512xf32> to vector<32x256xf32>
      %cst_25 = arith.constant 0xFF800000 : f32
      %75 = vector.broadcast %cst_25 : f32 to vector<32x256xf32>
      %76 = arith.select %22, %74, %75 : vector<32x256xi1>, vector<32x256xf32>
      %77 = arith.maximumf %73, %76 : vector<32x256xf32>
      %78 = vector.extract_strided_slice %64 {offsets = [0, 130], sizes = [32, 256], strides = [1, 1]} : vector<32x512xf32> to vector<32x256xf32>
      %cst_26 = arith.constant 0xFF800000 : f32
      %79 = vector.broadcast %cst_26 : f32 to vector<32x256xf32>
      %80 = arith.select %24, %78, %79 : vector<32x256xi1>, vector<32x256xf32>
      %81 = arith.maximumf %77, %80 : vector<32x256xf32>
      %82 = tpu.concatenate %26, %81, %26 in 1 : vector<32x128xf32>, vector<32x256xf32>, vector<32x128xf32> -> vector<32x512xf32>
      %83 = vector.extract_strided_slice %82 {offsets = [0, 128], sizes = [32, 256], strides = [1, 1]} : vector<32x512xf32> to vector<32x256xf32>
      %84 = vector.extract_strided_slice %82 {offsets = [0, 96], sizes = [32, 256], strides = [1, 1]} : vector<32x512xf32> to vector<32x256xf32>
      %85 = arith.maximumf %83, %84 : vector<32x256xf32>
      %86 = vector.extract_strided_slice %82 {offsets = [0, 112], sizes = [32, 256], strides = [1, 1]} : vector<32x512xf32> to vector<32x256xf32>
      %87 = arith.maximumf %85, %86 : vector<32x256xf32>
      %88 = vector.extract_strided_slice %82 {offsets = [0, 144], sizes = [32, 256], strides = [1, 1]} : vector<32x512xf32> to vector<32x256xf32>
      %89 = arith.maximumf %87, %88 : vector<32x256xf32>
      %90 = vector.extract_strided_slice %82 {offsets = [0, 160], sizes = [32, 256], strides = [1, 1]} : vector<32x512xf32> to vector<32x256xf32>
      %91 = arith.maximumf %89, %90 : vector<32x256xf32>
      %92 = arith.addf %arg5, %91 : vector<32x256xf32>
      scf.yield %92, %91 : vector<32x256xf32>, vector<32x256xf32>
    }
    %c4_i32_10 = arith.constant 4 : i32
    %c0_11 = arith.constant 0 : index
    %c0_12 = arith.constant 0 : index
    %c0_13 = arith.constant 0 : index
    %33 = vector.load %arg3[%c0_11, %c0_12, %c0_13] : memref<1x32x256xf32, #tpu.memory_space<vmem>>, vector<1x32x256xf32>
    %34 = vector.shape_cast %33 : vector<1x32x256xf32> to vector<32x256xf32>
    %35 = vector.shape_cast %32#0 : vector<32x256xf32> to vector<1x32x256xf32>
    tpu.vector_store %arg3[%c0_11, %c0_12, %c0_13], %35 {strides = array<i32>} : memref<1x32x256xf32, #tpu.memory_space<vmem>>, vector<1x32x256xf32>,
    return
  }
  func.func @transform_0(%arg0: i32) -> (i32, i32, i32) {
    %c0_i32 = arith.constant 0 : i32
    %c0_i32_0 = arith.constant 0 : i32
    %c0_i32_1 = arith.constant 0 : i32
    return %arg0, %c0_i32, %c0_i32_0 : i32, i32, i32
  }
  func.func @transform_1(%arg0: i32) -> (i32, i32, i32) {
    %c0_i32 = arith.constant 0 : i32
    %c0_i32_0 = arith.constant 0 : i32
    %c0_i32_1 = arith.constant 0 : i32
    %c0_i32_2 = arith.constant 0 : i32
    return %c0_i32, %c0_i32_0, %c0_i32_1 : i32, i32, i32
  }
  func.func @transform_2(%arg0: i32) -> (i32, i32, i32) {
    %c0_i32 = arith.constant 0 : i32
    %c0_i32_0 = arith.constant 0 : i32
    %c0_i32_1 = arith.constant 0 : i32
    return %arg0, %c0_i32, %c0_i32_0 : i32, i32, i32
  }
}

</mosaic_0001>

<bundles_post_ra>
// kernel: chained_residual_pool_improved.1
= control target key start
LH: loop header
LB: loop body
LE: loop exit
PB: predicated region body
PF: predicated region fallthrough
CT: control target
= control target key end

     0   :  { %s1677_s9 = smov 0   ;;  %s2563_s0 = inlined_call_operand.vmem [shape: f32[2,32,256], index: 0, kind: input, shape index: {}]   ;;  %s2564_s1 = inlined_call_operand.vmem [shape: bf16[4,32,288], index: 1, kind: input, shape index: {}]   ;;  %s2565_s2 = inlined_call_operand.vmem [shape: f32[2,32,256], index: 2, kind: output, shape index: {}]  }
   0x1 LB: > { %s1309_s10 = sadd.s32 4294967295, %s1575_s9   ;;  %p1313_p0 = scmp.ge.s32.totalorder %s1575_s9, 1  ;;  %s1575_s9 = sphi %s1677_s9, %s12_s9  }
   0x2   : > { %p112_p1 = scmp.lt.s32.totalorder %s1575_s9, 3 }
   0x4   : > { %p113_p2 = pnand %p1313_p0, %p112_p1 }
   0x5   : > { %p134_p3 = scmp.lt.s32.totalorder (!%p113_p2), %s1309_s10, 1  ;;  %s1738_s18 = smov (!%p113_p2), 0  }
   0x6   : > { %116 = sbr.rel (%p113_p2) target bundleno = 1002 (0x3ea), region = 28 }
   0xb   : > { %v147_v0 = vlaneseq  ;;  %s2589_s10 = smov (!%p134_p3, %s1309_s10), 1 }
   0xc   : > { %s1329_s11 = sshll.u32 %s2589_s10, 6 }
   0xd   : > { %v148_v1 = vand.u32 127, %v147_v0  ;;  %s138_s14 = scalar_lea.vmem %s2563_s0, %s1329_s11  ;;  %s1694_s17 = scalar_lea.vmem %s2565_s2, %s1329_s11 }
   0xe   : > { %v182_v5 = vld [vmem:[%s138_s14] sm:$0xff]  ;;  %v183_v6 = vld [vmem:[%s138_s14 + $0x8] sm:$0xff]  ;;  %v184_v7 = vld [vmem:[%s138_s14 + $0x10] sm:$0xff] }
   0xf   : > { %v149_v2 = vadd.s32 128, %v148_v1  ;;  %v1686_v3 = vand.u32 15, %v148_v1  ;;  %v185_v8 = vld [vmem:[%s138_s14 + $0x18] sm:$0xff]  ;;  %v186_v9 = vld [vmem:[%s138_s14 + $0x20] sm:$0xff]  ;;  %v190_v10 = vmax.f32 %v182_v5, 0.0   ;;  %v191_v11 = vmax.f32 %v183_v6, 0.0  }
  0x10   : > { %v187_v12 = vld [vmem:[%s138_s14 + $0x28] sm:$0xff]  ;;  %v188_v13 = vld [vmem:[%s138_s14 + $0x30] sm:$0xff]  ;;  %v189_v14 = vld [vmem:[%s138_s14 + $0x38] sm:$0xff]  ;;  %v192_v15 = vmax.f32 %v184_v7, 0.0   ;;  %v193_v16 = vmax.f32 %v185_v8, 0.0   ;;  %v194_v17 = vmax.f32 %v186_v9, 0.0  }
  0x11   : > { %v1696_v4 = vand.u32 15, %v149_v2  ;;  %vm174_vm0 = vcmp.ge.s32.totalorder %v1686_v3, 1  ;;  %vm176_vm1 = vcmp.ge.s32.totalorder %v1686_v3, 2  ;;  %vm178_vm2 = vcmp.le.s32.totalorder %v1686_v3, 14 }
  0x12   : > { %vm180_vm3 = vcmp.le.s32.totalorder %v1686_v3, 13  ;;  %v195_v18 = vmax.f32 %v187_v12, 0.0   ;;  %v196_v19 = vmax.f32 %v188_v13, 0.0   ;;  %v197_v20 = vmax.f32 %v189_v14, 0.0  }
  0x13   : > { %vm175_vm4 = vcmp.ge.s32.totalorder %v1696_v4, 1  ;;  %vm177_vm5 = vcmp.ge.s32.totalorder %v1696_v4, 2  ;;  %vm179_vm6 = vcmp.le.s32.totalorder %v1696_v4, 14  ;;  %vm181_vm7 = vcmp.le.s32.totalorder %v1696_v4, 13 }
  0x14   : > { %v2566_v21 = vmov %v197_v20  ;;  %v2567_v22 = vmov %v196_v19  ;;  %v2568_v23 = vmov %v195_v18  ;;  %v2569_v24 = vmov %v194_v17 }
  0x15   : > { %v2570_v25 = vmov %v193_v16  ;;  %v2571_v26 = vmov %v192_v15  ;;  %v2572_v27 = vmov %v191_v11  ;;  %v2573_v28 = vmov %v190_v10 }
  0x16 LB: >> { %v238_v29 = vshrl.u32 %v147_v0, 7  ;;  %vm257_vm8 = vmpackc.low %vm179_vm6, %vm178_vm2  ;;  %v1645_v30 = vmov 0   ;;  %s1646_s19 = smov 113   ;;  %s1647_s20 = smov 127   ;;  %v1797_v39 = vpack.c.bf16 %v1583_v22, %v1591_v24  ;;  %v1799_v40 = vpack.c.bf16 %v1579_v21, %v1587_v23  ;;  %s1643_s18 = sphi %s1738_s18, %s203_s18   ;;  %v1639_v10 = vphi %v190_v10, %v2587_v10   ;;  %v1635_v11 = vphi %v191_v11, %v2586_v11   ;;  %v1631_v15 = vphi %v192_v15, %v2585_v15   ;;  %v1627_v16 = vphi %v193_v16, %v2584_v16   ;;  %v1623_v17 = vphi %v194_v17, %v2583_v17   ;;  %v1619_v18 = vphi %v195_v18, %v2582_v18   ;;  %v1615_v19 = vphi %v196_v19, %v2581_v19   ;;  %v1611_v20 = vphi %v197_v20, %v2580_v20   ;;  %v1607_v28 = vphi %v2573_v28, %v2437_v28   ;;  %v1603_v27 = vphi %v2572_v27, %v2579_v27   ;;  %v1599_v26 = vphi %v2571_v26, %v1177_v26   ;;  %v1595_v25 = vphi %v2570_v25, %v1178_v25   ;;  %v1591_v24 = vphi %v2569_v24, %v1179_v24   ;;  %v1587_v23 = vphi %v2568_v23, %v1180_v23   ;;  %v1583_v22 = vphi %v2567_v22, %v1181_v22   ;;  %v1579_v21 = vphi %v2566_v21, %v1182_v21  }
  0x17   : >> { %v258_v31 = vsel %vm257_vm8, 65537, %v1645_v30  ;;  %vm235_vm9 = vmpackc.low %vm175_vm4, %vm174_vm0  ;;  %770 = vmatprep.mubr.bf16.mxu1 %v1645_v30  ;;  %s1648_s21 = smov 15   ;;  %s1649_s22 = smov 1   ;;  %v1805_v41 = vpack.c.bf16 %v1599_v26, %v1607_v28  ;;  %v1809_v42 = vpack.c.bf16 %v1595_v25, %v1603_v27  ;;  %vm283_vm10 = vcmask 1039360  }
  0x18   : >> { %v239_v32 = vsub.s32 0, %v238_v29  ;;  %v236_v33 = vsel %vm235_vm9, 65537, %v1645_v30  ;;  %v243_v34 = vsub.s32 4, %v238_v29  ;;  %s1650_s23 = smov 17   ;;  %s1651_s24 = smov 126   ;;  %vm271_vm9 = vcmask 924672  }
  0x19   : >> { %s1652_s25 = smov 112   ;;  %s1653_s26 = smov 111  }
  0x1a   : >> { %v262_v35 = vrot.slane %v258_v31, %v239_v32  ;;  %v240_v36 = vrot.slane %v236_v33, %v239_v32  ;;  %v266_v37 = vrot.slane %v258_v31, %v243_v34  ;;  %v244_v38 = vrot.slane %v236_v33, %v243_v34  ;;  %s1654_s27 = smov 95   ;;  %s1655_s28 = smov 96  }
  0x1b   : >> { %s1656_s29 = smov 110   ;;  %s1657_s30 = smov 94  }
  0x1c   : >> { %267 = vrot.lane.b32.xlu1 %v262_v35, %s1646_s19  ;;  %279 = vrot.lane.b32.xlu0 %v240_v36, %s1647_s20  ;;  %s1331_s3 = smul.u32 48, %s1643_s18  ;;  %s1659_s7 = smov 2  }
  0x1d   : >> { %s1660_s8 = smov 16   ;;  %s1661_s10 = smov 32  }
  0x1e   : >> { %s2033_s6 = scalar_lea.vmem %s2564_s1, %s1331_s3  ;;  %s203_s18 = sadd.s32 1, %s1643_s18  }
  0x1f   : >> { %p2502_p4 = scmp.ge.s32.totalorder %s203_s18, 4  }
  0x20   : >> { %269 = vrot.lane.b32.xlu1 %v266_v37, %s1646_s19  ;;  %281 = vrot.lane.b32.xlu0 %v244_v38, %s1647_s20 }
  0x24   : >> { %305 = vrot.lane.b32.xlu1 %v244_v38, %s1648_s21  ;;  %303 = vrot.lane.b32.xlu0 %v240_v36, %s1648_s21 }
  0x28   : >> { %293 = vrot.lane.b32.xlu1 %v266_v37, %s1649_s22  ;;  %291 = vrot.lane.b32.xlu0 %v262_v35, %s1649_s22 }
  0x2c   : >> { %317 = vrot.lane.b32.xlu1 %v266_v37, %s1650_s23  ;;  %315 = vrot.lane.b32.xlu0 %v262_v35, %s1650_s23 }
  0x30   : >> { %350 = vrot.lane.b32.xlu1 %v1645_v30, %s1651_s24  ;;  %369 = vrot.lane.b32.xlu0 %v1645_v30, %s1652_s25 }
  0x34   : >> { %338 = vrot.lane.b32.xlu0 %v1797_v39, %s1647_s20  ;;  %340 = vrot.lane.b32.xlu1 %v1799_v40, %s1647_s20 }
  0x38   : >> { %332 = vrot.lane.b32.xlu0 %v1645_v30, %s1647_s20  ;;  %334 = vrot.lane.b32.xlu1 %v1805_v41, %s1647_s20 }
  0x3c   : >> { %336 = vrot.lane.b32.xlu0 %v1809_v42, %s1647_s20  ;;  %245 = vrot.lane.b32.xlu1 %v240_v36, %s1653_s26 }
  0x40   : >> { %247 = vrot.lane.b32.xlu0 %v244_v38, %s1653_s26  ;;  %436 = vrot.lane.b32.xlu1 %v1645_v30, %s1654_s27 }
  0x44   : >> { %438 = vrot.lane.b32.xlu0 %v1797_v39, %s1654_s27  ;;  %440 = vrot.lane.b32.xlu1 %v1799_v40, %s1654_s27 }
  0x48   : >> { %434 = vrot.lane.b32.xlu1 %v1809_v42, %s1654_s27  ;;  %432 = vrot.lane.b32.xlu0 %v1805_v41, %s1654_s27 }
  0x4c   : >> { %421 = vrot.lane.b32.xlu0 %v1645_v30, %s1655_s28  ;;  %402 = vrot.lane.b32.xlu1 %v1645_v30, %s1656_s29 }
  0x50   : >> { %388 = vrot.lane.b32.xlu0 %v1797_v39, %s1653_s26  ;;  %390 = vrot.lane.b32.xlu1 %v1799_v40, %s1653_s26 }
  0x54   : >> { %455 = vrot.lane.b32.xlu0 %v1645_v30, %s1657_s30  ;;  %384 = vrot.lane.b32.xlu1 %v1805_v41, %s1653_s26 }
  0x58   : >> { %386 = vrot.lane.b32.xlu0 %v1809_v42, %s1653_s26 }
  0x8e   : >> { %v268_v43 = vpop.permute.xlu1 %267  ;;  %v280_v44 = vpop.permute.xlu0 %279 }
  0x92   : >> { %v270_v45 = vpop.permute.xlu1 %269  ;;  %v282_v46 = vpop.permute.xlu0 %281 }
  0x93   : >> { %vm286_vm11 = vcmp.ne.s16.totalorder %v282_v46, 0  ;;  %vm274_vm12 = vcmp.ne.s16.totalorder %v270_v45, 0  ;;  %v284_v1 = vsel %vm283_vm10, %v280_v44, %v282_v46  ;;  %v272_v22 = vsel %vm271_vm9, %v268_v43, %v270_v45 }
  0x94   : >> { %v288_v58 = vsel %vm286_vm11, %v1809_v42, 0  ;;  %v290_v59 = vsel %vm286_vm11, %v1799_v40, 0  ;;  %v278_v60 = vsel %vm274_vm12, %v1799_v40, 0  ;;  %v276_v61 = vsel %vm274_vm12, %v1809_v42, 0 }
  0x95   : >> { %vm285_vm15 = vcmp.ne.s16.totalorder %v284_v1, 0  ;;  %vm273_vm11 = vcmp.ne.s16.totalorder %v272_v22, 0  ;;  %vm295_vm9 = vcmask 7168  }
  0x96   : >> { %v1830_v47 = vpop.permute.xlu1 %305  ;;  %v1832_v48 = vpop.permute.xlu0 %303  ;;  %v289_v9 = vsel %vm285_vm15, %v1797_v39, 0  ;;  %v287_v25 = vsel %vm285_vm15, %v1805_v41, 0  ;;  %v275_v27 = vsel %vm273_vm11, %v1805_v41, 0  ;;  %v277_v28 = vsel %vm273_vm11, %v1797_v39, 0 }
  0x97   : >> { %vm309_vm14 = vcmp.ne.s16.totalorder %v1832_v48, 0 }
  0x98   : >> { %v313_v63 = vsel %vm309_vm14, %v1797_v39, 0  ;;  %v311_v6 = vsel %vm309_vm14, %v1805_v41, 0  ;;  %vm307_vm14 = vcmask 121856  }
  0x99   : >> { %v308_v35 = vsel %vm307_vm14, %v1832_v48, %v1830_v47  ;;  %vm249_vm14 = vcmask 908288  }
  0x9a   : >> { %v1834_v49 = vpop.permute.xlu1 %293  ;;  %v1836_v50 = vpop.permute.xlu0 %291  ;;  %vm310_vm15 = vcmp.ne.s16.totalorder %v308_v35, 0 }
  0x9b   : >> { %vm297_vm13 = vcmp.ne.s16.totalorder %v1836_v50, 0  ;;  %v314_v36 = vsel %vm310_vm15, %v1799_v40, 0  ;;  %v312_v43 = vsel %vm310_vm15, %v1809_v42, 0  ;;  %v296_v45 = vsel %vm295_vm9, %v1836_v50, %v1834_v49 }
  0x9c   : >> { %v301_v62 = vsel %vm297_vm13, %v1797_v39, 0  ;;  %v299_v5 = vsel %vm297_vm13, %v1805_v41, 0  ;;  %vm442_vm13 = vcmask 777216  }
  0x9e   : >> { %v1838_v51 = vpop.permute.xlu1 %317  ;;  %v1840_v52 = vpop.permute.xlu0 %315 }
  0x9f   : >> { %vm321_vm8 = vcmp.ne.s16.totalorder %v1840_v52, 0 }
  0xa0   : >> { %v325_v12 = vsel %vm321_vm8, %v1797_v39, 0  ;;  %v323_v21 = vsel %vm321_vm8, %v1805_v41, 0  ;;  %vm319_vm8 = vcmask 138240  }
  0xa1   : >> { %v320_v37 = vsel %vm319_vm8, %v1840_v52, %v1838_v51 }
  0xa2   : >> { %v1842_v53 = vpop.permute.xlu1 %350  ;;  %v1844_v54 = vpop.permute.xlu0 %369  ;;  %vm322_vm11 = vcmp.ne.s16.totalorder %v320_v37, 0 }
  0xa3   : >> { %v326_v46 = vsel %vm322_vm11, %v1799_v40, 0  ;;  %v324_v48 = vsel %vm322_vm11, %v1809_v42, 0  ;;  %vm360_vm11 = vcmask 1031168  }
  0xa6   : >> { %v339_v55 = vpop.permute.xlu0 %338  ;;  %v341_v56 = vpop.permute.xlu1 %340 }
  0xa7   : >> { %520 = vrot.lane.b32.xlu0 %v341_v56, %s1650_s23  ;;  %v345_v57 = vsel %vm283_vm10, %v339_v55, %v341_v56 }
  0xa8   : >> { %518 = vrot.lane.b32.xlu1 %v345_v57, %s1650_s23 }
  0xaa   : >> { %v333_v2 = vpop.permute.xlu0 %332  ;;  %v335_v8 = vpop.permute.xlu1 %334 }
  0xab   : >> { %373 = vrot.lane.b32.xlu0 %v288_v58, %s1652_s25  ;;  %v342_v23 = vsel %vm283_vm10, %v333_v2, %v335_v8  ;;  %v344_v33 = vsel %vm283_vm10, %v333_v2, %v339_v55 }
  0xac   : >> { %377 = vrot.lane.b32.xlu1 %v290_v59, %s1652_s25 }
  0xae   : >> { %v337_v7 = vpop.permute.xlu0 %336  ;;  %v246_v14 = vpop.permute.xlu1 %245 }
  0xaf   : >> { %358 = vrot.lane.b32.xlu0 %v278_v60, %s1651_s24  ;;  %v343_v13 = vsel %vm283_vm10, %v335_v8, %v337_v7 }
  0xb0   : >> { %354 = vrot.lane.b32.xlu1 %v276_v61, %s1651_s24 }
  0xb2   : >> { %v248_v24 = vpop.permute.xlu0 %247  ;;  %v437_v26 = vpop.permute.xlu1 %436 }
  0xb3   : >> { %404 = vrot.lane.b32.xlu0 %v301_v62, %s1656_s29  ;;  %vm252_vm12 = vcmp.ne.s16.totalorder %v248_v24, 0  ;;  %v250_v47 = vsel %vm249_vm14, %v246_v14, %v248_v24 }
  0xb4   : >> { %423 = vrot.lane.b32.xlu1 %v313_v63, %s1655_s28  ;;  %v256_v29 = vsel %vm252_vm12, %v1799_v40, 0  ;;  %v254_v38 = vsel %vm252_vm12, %v1809_v42, 0  ;;  %vm298_vm12 = vcmp.ne.s16.totalorder %v296_v45, 0  ;;  %vm251_vm15 = vcmp.ne.s16.totalorder %v250_v47, 0 }
  0xb5   : >> { %v302_v51 = vsel %vm298_vm12, %v1799_v40, 0  ;;  %v253_v49 = vsel %vm251_vm15, %v1805_v41, 0  ;;  %v300_v50 = vsel %vm298_vm12, %v1809_v42, 0  ;;  %v255_v56 = vsel %vm251_vm15, %v1797_v39, 0 }
  0xb6   : >> { %v439_v31 = vpop.permute.xlu0 %438  ;;  %v441_v32 = vpop.permute.xlu1 %440  ;;  %vm427_vm12 = vcmask 785408   ;;  %vm461_vm15 = vcmask 769024  }
  0xb7   : >> { %398 = vrot.lane.b32.xlu0 %v299_v5, %s1656_s29  ;;  %v445_v34 = vsel %vm442_vm13, %v439_v31, %v441_v32  ;;  %v446_v44 = vsel %vm442_vm13, %v441_v32, %v437_v26 }
  0xb8   : >> { %417 = vrot.lane.b32.xlu1 %v311_v6, %s1655_s28 }
  0xba   : >> { %v433_v52 = vpop.permute.xlu0 %432  ;;  %v435_v55 = vpop.permute.xlu1 %434 }
  0xbb   : >> { %375 = vrot.lane.b32.xlu0 %v289_v9, %s1652_s25  ;;  %v443_v40 = vsel %vm442_vm13, %v433_v52, %v435_v55  ;;  %v444_v57 = vsel %vm442_vm13, %v435_v55, %v437_v26  ;;  %vm379_vm13 = vcmask 916480  }
  0xbc   : >> { %457 = vrot.lane.b32.xlu1 %v325_v12, %s1657_s30 }
  0xbe   : >> { %v1932_v41 = vpop.permute.xlu0 %421  ;;  %v1934_v58 = vpop.permute.xlu1 %402 }
  0xbf   : >> { %512 = vrot.lane.b32.xlu0 %v343_v13, %s1650_s23 }
  0xc0   : >> { %451 = vrot.lane.b32.xlu1 %v323_v21, %s1657_s30 }
  0xc2   : >> { %v389_v42 = vpop.permute.xlu0 %388  ;;  %v391_v60 = vpop.permute.xlu1 %390 }
  0xc3   : >> { %510 = vrot.lane.b32.xlu0 %v342_v23, %s1650_s23 }
  0xc4   : >> { %371 = vrot.lane.b32.xlu1 %v287_v25, %s1652_s25 }
  0xc6   : >> { %v1936_v59 = vpop.permute.xlu0 %455  ;;  %v1938_v39 = vpop.permute.xlu1 %384 }
  0xc7   : >> { %352 = vrot.lane.b32.xlu0 %v275_v27, %s1651_s24 }
  0xc8   : >> { %356 = vrot.lane.b32.xlu1 %v277_v28, %s1651_s24 }
  0xca   : >> { %v387_v61 = vpop.permute.xlu0 %386 }
  0xcb   : >> { %508 = vrot.lane.b32.xlu0 %v256_v29, %s1650_s23 }
  0xcc   : >> { %516 = vrot.lane.b32.xlu1 %v344_v33, %s1650_s23 }
  0xcf   : >> { %590 = vrot.lane.b32.xlu0 %v445_v34, %s1650_s23 }
  0xd0   : >> { %514 = vrot.lane.b32.xlu1 %v337_v7, %s1650_s23 }
  0xd3   : >> { %425 = vrot.lane.b32.xlu0 %v314_v36, %s1655_s28 }
  0xd4   : >> { %500 = vrot.lane.b32.xlu1 %v1645_v30, %s1650_s23 }
  0xd7   : >> { %419 = vrot.lane.b32.xlu0 %v312_v43, %s1655_s28 }
  0xd8   : >> { %504 = vrot.lane.b32.xlu1 %v254_v38, %s1650_s23 }
  0xdb   : >> { %459 = vrot.lane.b32.xlu0 %v326_v46, %s1657_s30  ;;  %v392_v46 = vsel %vm249_vm14, %v1938_v39, %v387_v61 }
  0xdc   : >> { %592 = vrot.lane.b32.xlu1 %v446_v44, %s1650_s23 }
  0xdf   : >> { %453 = vrot.lane.b32.xlu0 %v324_v48, %s1657_s30 }
  0xe0   : >> { %406 = vrot.lane.b32.xlu1 %v302_v51, %s1656_s29 }
  0xe3   : >> { %502 = vrot.lane.b32.xlu0 %v253_v49, %s1650_s23 }
  0xe4   : >> { %400 = vrot.lane.b32.xlu1 %v300_v50, %s1656_s29 }
  0xe7   : >> { %588 = vrot.lane.b32.xlu0 %v439_v31, %s1650_s23 }
  0xe8   : >> { %506 = vrot.lane.b32.xlu1 %v255_v56, %s1650_s23 }
  0xeb   : >> { %586 = vrot.lane.b32.xlu0 %v444_v57, %s1650_s23 }
  0xec   : >> { %584 = vrot.lane.b32.xlu1 %v443_v40, %s1650_s23 }
 0x119   : >> { %v1940_v62 = vpop.permute.xlu0 %520 }
 0x11a   : >> { %v1942_v63 = vpop.permute.xlu1 %518 }
 0x11d   : >> { %v374_v1 = vpop.permute.xlu0 %373 }
 0x11e   : >> { %538 = vrot.lane.b32.xlu1 %v374_v1, %s1650_s23  ;;  %v378_v2 = vpop.permute.xlu1 %377 }
 0x11f   : >> { %544 = vrot.lane.b32.xlu0 %v378_v2, %s1650_s23 }
 0x121   : >> { %v359_v5 = vpop.permute.xlu0 %358 }
 0x122   : >> { %v355_v6 = vpop.permute.xlu1 %354 }
 0x123   : >> { %526 = vrot.lane.b32.xlu1 %v355_v6, %s1650_s23  ;;  %532 = vrot.lane.b32.xlu0 %v359_v5, %s1650_s23 }
 0x125   : >> { %v1948_v7 = vpop.permute.xlu0 %404 }
 0x126   : >> { %v424_v8 = vpop.permute.xlu1 %423 }
 0x129   : >> { %v1950_v9 = vpop.permute.xlu0 %398 }
 0x12a   : >> { %v418_v12 = vpop.permute.xlu1 %417 }
 0x12d   : >> { %v376_v13 = vpop.permute.xlu0 %375 }
 0x12e   : >> { %v1952_v14 = vpop.permute.xlu1 %457  ;;  %v383_v21 = vsel %vm379_vm13, %v376_v13, %v378_v2  ;;  %v382_v24 = vsel %vm379_vm13, %v1844_v54, %v376_v13 }
 0x12f   : >> { %542 = vrot.lane.b32.xlu1 %v383_v21, %s1650_s23 }
 0x131   : >> { %v1956_v22 = vpop.permute.xlu0 %512 }
 0x132   : >> { %v1958_v23 = vpop.permute.xlu1 %451 }
 0x133   : >> { %540 = vrot.lane.b32.xlu1 %v382_v24, %s1650_s23 }
 0x135   : >> { %v1963_v25 = vpop.permute.xlu0 %510 }
 0x136   : >> { %v372_v26 = vpop.permute.xlu1 %371 }
 0x137   : >> { %v381_v27 = vsel %vm379_vm13, %v372_v26, %v374_v1  ;;  %v380_v31 = vsel %vm379_vm13, %v1844_v54, %v372_v26 }
 0x138   : >> { %536 = vrot.lane.b32.xlu0 %v381_v27, %s1650_s23 }
 0x139   : >> { %v353_v32 = vpop.permute.xlu0 %352 }
 0x13a   : >> { %v357_v28 = vpop.permute.xlu1 %356  ;;  %v362_v34 = vsel %vm360_vm11, %v353_v32, %v355_v6  ;;  %v361_v36 = vsel %vm360_vm11, %v1842_v53, %v353_v32 }
 0x13b   : >> { %v364_v29 = vsel %vm360_vm11, %v357_v28, %v359_v5  ;;  %v363_v33 = vsel %vm360_vm11, %v1842_v53, %v357_v28  ;;  %v393_v53 = vsel %vm249_vm14, %v389_v42, %v391_v60  ;;  %vm408_vm14 = vcmask 900096  }
 0x13c   : >> { %530 = vrot.lane.b32.xlu1 %v364_v29, %s1650_s23  ;;  %534 = vrot.lane.b32.xlu0 %v380_v31, %s1650_s23 }
 0x13d   : >> { %v1987_v37 = vpop.permute.xlu0 %508 }
 0x13e   : >> { %v1975_v35 = vpop.permute.xlu1 %516 }
 0x140   : >> { %528 = vrot.lane.b32.xlu1 %v363_v33, %s1650_s23  ;;  %524 = vrot.lane.b32.xlu0 %v362_v34, %s1650_s23 }
 0x141   : >> { %v1996_v43 = vpop.permute.xlu0 %590 }
 0x142   : >> { %v1983_v54 = vpop.permute.xlu1 %514 }
 0x144   : >> { %582 = vrot.lane.b32.xlu1 %v433_v52, %s1650_s23  ;;  %522 = vrot.lane.b32.xlu0 %v361_v36, %s1650_s23 }
 0x145   : >> { %v426_v45 = vpop.permute.xlu0 %425 }
 0x146   : >> { %v1989_v38 = vpop.permute.xlu1 %500  ;;  %v431_v48 = vsel %vm427_vm12, %v426_v45, %v1932_v41  ;;  %v430_v51 = vsel %vm427_vm12, %v424_v8, %v426_v45 }
 0x148   : >> { %570 = vrot.lane.b32.xlu1 %v418_v12, %s1650_s23  ;;  %576 = vrot.lane.b32.xlu0 %v424_v8, %s1650_s23 }
 0x149   : >> { %v420_v49 = vpop.permute.xlu0 %419 }
 0x14a   : >> { %v2000_v44 = vpop.permute.xlu1 %504  ;;  %v429_v52 = vsel %vm427_vm12, %v420_v49, %v1932_v41  ;;  %v428_v55 = vsel %vm427_vm12, %v418_v12, %v420_v49 }
 0x14c   : >> { %558 = vrot.lane.b32.xlu1 %v1950_v9, %s1650_s23  ;;  %564 = vrot.lane.b32.xlu0 %v1948_v7, %s1650_s23 }
 0x14e   : >> { %v2007_v47 = vpop.permute.xlu1 %592 }
 0x150   : >> { %556 = vrot.lane.b32.xlu1 %v391_v60, %s1650_s23  ;;  %554 = vrot.lane.b32.xlu0 %v393_v53, %s1650_s23 }
 0x152   : >> { %v407_v50 = vpop.permute.xlu1 %406 }
 0x153   : >> { %v411_v56 = vsel %vm408_vm14, %v1948_v7, %v407_v50  ;;  %v412_v40 = vsel %vm408_vm14, %v407_v50, %v1934_v58  ;;  %v1658_v7 = vmov -inf  }
 0x154   : >> { %600 = vrot.lane.b32.xlu1 %v1952_v14, %s1650_s23  ;;  %552 = vrot.lane.b32.xlu0 %v389_v42, %s1650_s23  ;;  %v460_v42 = vpop.permute.xlu0 %459 }
 0x155   : >> { %v465_v1 = vsel %vm461_vm15, %v460_v42, %v1936_v59  ;;  %v464_v2 = vsel %vm461_vm15, %v1952_v14, %v460_v42 }
 0x156   : >> { %v401_v57 = vpop.permute.xlu1 %400 }
 0x157   : >> { %v410_v41 = vsel %vm408_vm14, %v401_v57, %v1934_v58  ;;  %v409_v60 = vsel %vm408_vm14, %v1950_v9, %v401_v57  ;;  %v611_v57 = vsel %vm319_vm8, %v1956_v22, %v1983_v54  ;;  %vm678_vm14 = vcmask 261120  }
 0x158   : >> { %550 = vrot.lane.b32.xlu1 %v387_v61, %s1650_s23  ;;  %548 = vrot.lane.b32.xlu0 %v392_v46, %s1650_s23  ;;  %v1495_v61 = vld [vmem:[%s2033_s6 + $0x4] ss:$12 sps:$4 sm:$0xff]   ;;  %v454_v5 = vpop.permute.xlu0 %453 }
 0x159   : >> { %717 = vmatprep.mubr.bf16.mxu0 %v1495_v61  ;;  %v463_v58 = vsel %vm461_vm15, %v454_v5, %v1936_v59  ;;  %v462_v6 = vsel %vm461_vm15, %v1958_v23, %v454_v5 }
 0x15a   : >> { %v507_v59 = vpop.permute.xlu1 %506 }
 0x15c   : >> { %580 = vrot.lane.b32.xlu1 %v431_v48, %s1650_s23  ;;  %578 = vrot.lane.b32.xlu0 %v430_v51, %s1650_s23  ;;  %v503_v8 = vpop.permute.xlu0 %502 }
 0x15e   : >> { %v2056_v9 = vpop.permute.xlu1 %584 }
 0x160   : >> { %574 = vrot.lane.b32.xlu0 %v429_v52, %s1650_s23  ;;  %572 = vrot.lane.b32.xlu1 %v428_v55, %s1650_s23  ;;  %v589_v12 = vpop.permute.xlu0 %588  ;;  %v613_v52 = vsel %vm319_vm8, %v1942_v63, %v1940_v62  ;;  %v609_v62 = vsel %vm319_vm8, %v507_v59, %v1987_v37 }
 0x164   : >> { %566 = vrot.lane.b32.xlu0 %v411_v56, %s1650_s23  ;;  %568 = vrot.lane.b32.xlu1 %v412_v40, %s1650_s23  ;;  %v587_v13 = vpop.permute.xlu0 %586  ;;  %v612_v40 = vsel %vm319_vm8, %v1975_v35, %v1942_v63  ;;  %v608_v63 = vsel %vm319_vm8, %v1989_v38, %v507_v59  ;;  %v607_v35 = vsel %vm319_vm8, %v503_v8, %v2000_v44 }
 0x165   : >> { %v635_v44 = vsel %vm319_vm8, %v2056_v9, %v587_v13 }
 0x168   : >> { %562 = vrot.lane.b32.xlu0 %v410_v41, %s1650_s23  ;;  %560 = vrot.lane.b32.xlu1 %v409_v60, %s1650_s23  ;;  %v610_v60 = vsel %vm319_vm8, %v1963_v25, %v1956_v22  ;;  %v606_v22 = vsel %vm319_vm8, %v1989_v38, %v503_v8  ;;  %v637_v25 = vsel %vm319_vm8, %v1996_v43, %v2007_v47 }
 0x16c   : >> { %604 = vrot.lane.b32.xlu1 %v465_v1, %s1650_s23  ;;  %602 = vrot.lane.b32.xlu0 %v464_v2, %s1650_s23 }
 0x170   : >> { %598 = vrot.lane.b32.xlu1 %v463_v58, %s1650_s23  ;;  %596 = vrot.lane.b32.xlu0 %v462_v6, %s1650_s23  ;;  %v636_v58 = vsel %vm319_vm8, %v589_v12, %v1996_v43 }
 0x174   : >> { %594 = vrot.lane.b32.xlu1 %v1958_v23, %s1650_s23  ;;  %546 = vrot.lane.b32.xlu0 %v1938_v39, %s1650_s23 }
 0x178   : >> { %851 = vrot.lane.b32.xlu1 %v1658_v7, %s1659_s7  ;;  %800 = vrot.lane.b32.xlu0 %v1658_v7, %s1649_s22 }
 0x17c   : >> { %957 = vrot.lane.b32.xlu1 %v1658_v7, %s1651_s24  ;;  %906 = vrot.lane.b32.xlu0 %v1658_v7, %s1647_s20 }
 0x190   : >> { %v539_v39 = vpop.permute.xlu1 %538 }
 0x191   : >> { %v545_v21 = vpop.permute.xlu0 %544 }
 0x195   : >> { %v527_v14 = vpop.permute.xlu1 %526  ;;  %v533_v27 = vpop.permute.xlu0 %532 }
 0x1a1   : >> { %v543_v23 = vpop.permute.xlu1 %542 }
 0x1a2   : >> { %v621_v24 = vsel %vm319_vm8, %v543_v23, %v545_v21 }
 0x1a3   : >> { %685 = vmatprep.subr.bf16.mxu0 %v621_v24 }
 0x1a5   : >> { %v541_v26 = vpop.permute.xlu1 %540 }
 0x1a6   : >> { %v620_v28 = vsel %vm319_vm8, %v541_v26, %v543_v23 }
 0x1a7   : >> { %686 = vmatpush1.bf16.msra.mxu0 %v620_v28 }
 0x1aa   : >> { %v537_v29 = vpop.permute.xlu0 %536 }
 0x1ab   : >> { %v619_v31 = vsel %vm319_vm8, %v537_v29, %v539_v39 }
 0x1ac   : >> { %687 = vmatprep.subr.bf16.mxu0 %v619_v31 }
 0x1ae   : >> { %v531_v32 = vpop.permute.xlu1 %530  ;;  %v535_v33 = vpop.permute.xlu0 %534 }
 0x1af   : >> { %v618_v34 = vsel %vm319_vm8, %v535_v33, %v537_v29  ;;  %v617_v36 = vsel %vm319_vm8, %v531_v32, %v533_v27 }
 0x1b0   : >> { %688 = vmatpush1.bf16.msra.mxu0 %v618_v34 }
 0x1b1   : >> { %689 = vmatprep.subr.bf16.mxu0 %v617_v36 }
 0x1b2   : >> { %v529_v53 = vpop.permute.xlu1 %528  ;;  %v525_v45 = vpop.permute.xlu0 %524 }
 0x1b3   : >> { %v616_v46 = vsel %vm319_vm8, %v529_v53, %v531_v32  ;;  %v615_v48 = vsel %vm319_vm8, %v525_v45, %v527_v14 }
 0x1b4   : >> { %690 = vmatpush1.bf16.msra.mxu0 %v616_v46 }
 0x1b5   : >> { %691 = vmatprep.subr.bf16.mxu0 %v615_v48 }
 0x1b6   : >> { %v583_v51 = vpop.permute.xlu1 %582  ;;  %v523_v49 = vpop.permute.xlu0 %522 }
 0x1b7   : >> { %v614_v50 = vsel %vm319_vm8, %v523_v49, %v525_v45  ;;  %v634_v38 = vsel %vm319_vm8, %v583_v51, %v2056_v9 }
 0x1b8   : >> { %692 = vmatpush1.bf16.msra.mxu0 %v614_v50 }
 0x1b9   : >> { %693 = vmatprep.subr.bf16.mxu0 %v613_v52 }
 0x1ba   : >> { %v571_v55 = vpop.permute.xlu1 %570  ;;  %v577_v56 = vpop.permute.xlu0 %576 }
 0x1bc   : >> { %694 = vmatpush1.bf16.msra.mxu0 %v612_v40  ;;  %v1497_v40 = vld [vmem:[%s2033_s6 + $0x1c] ss:$12 sps:$4 sm:$0xff]  }
 0x1bd   : >> { %695 = vmatprep.subr.bf16.mxu0 %v611_v57  ;;  %v1499_v57 = vld [vmem:[%s2033_s6 + $0x18] ss:$12 sps:$4 sm:$0xff]  }
 0x1be   : >> { %v559_v42 = vpop.permute.xlu1 %558  ;;  %v565_v41 = vpop.permute.xlu0 %564 }
 0x1c0   : >> { %696 = vmatpush1.bf16.msra.mxu0 %v610_v60 }
 0x1c1   : >> { %697 = vmatprep.subr.bf16.mxu0 %v609_v62 }
 0x1c2   : >> { %v557_v61 = vpop.permute.xlu1 %556  ;;  %v555_v1 = vpop.permute.xlu0 %554 }
 0x1c3   : >> { %v625_v34 = vsel %vm319_vm8, %v555_v1, %v557_v61 }
 0x1c4   : >> { %698 = vmatpush1.bf16.msra.mxu0 %v608_v63 }
 0x1c5   : >> { %699 = vmatprep.subr.bf16.mxu0 %v607_v35 }
 0x1c6   : >> { %v601_v54 = vpop.permute.xlu1 %600  ;;  %v553_v2 = vpop.permute.xlu0 %552 }
 0x1c7   : >> { %v624_v45 = vsel %vm319_vm8, %v553_v2, %v555_v1 }
 0x1c8   : >> { %700 = vmatpush1.bf16.msra.mxu0 %v606_v22 }
 0x1c9   : >> { %701 = vmatprep.subr.bf16.mxu0 %v637_v25 }
 0x1ca   : >> { %v551_v37 = vpop.permute.xlu1 %550  ;;  %v549_v5 = vpop.permute.xlu0 %548 }
 0x1cb   : >> { %v623_v48 = vsel %vm319_vm8, %v549_v5, %v551_v37 }
 0x1cc   : >> { %702 = vmatpush2.bf16.msra.mxu0 %v636_v58 }
 0x1cd   : >> { %703 = vmatprep.subr.bf16.mxu0 %v635_v44 }
 0x1ce   : >> { %v581_v6 = vpop.permute.xlu1 %580  ;;  %v579_v59 = vpop.permute.xlu0 %578 }
 0x1cf   : >> { %v633_v8 = vsel %vm319_vm8, %v579_v59, %v581_v6  ;;  %v632_v14 = vsel %vm319_vm8, %v577_v56, %v579_v59  ;;  %v1496_v56 = vld [vmem:[%s2033_s6 + $0x8] ss:$12 sps:$4 sm:$0xff]  }
 0x1d0   : >> { %704 = vmatpush2.bf16.msra.mxu0 %v634_v38 }
 0x1d1   : >> { %705 = vmatprep.subr.bf16.mxu0 %v633_v8 }
 0x1d2   : >> { %v573_v47 = vpop.permute.xlu1 %572  ;;  %v575_v39 = vpop.permute.xlu0 %574 }
 0x1d3   : >> { %v631_v43 = vsel %vm319_vm8, %v573_v47, %v575_v39  ;;  %v630_v21 = vsel %vm319_vm8, %v571_v55, %v573_v47  ;;  %v1493_v55 = vld [vmem:[%s2033_s6] ss:$12 sps:$4 sm:$0xff]  }
 0x1d4   : >> { %706 = vmatpush2.bf16.msra.mxu0 %v632_v14 }
 0x1d5   : >> { %707 = vmatprep.subr.bf16.mxu0 %v631_v43 }
 0x1d6   : >> { %v569_v12 = vpop.permute.xlu1 %568  ;;  %v567_v13 = vpop.permute.xlu0 %566 }
 0x1d7   : >> { %v629_v23 = vsel %vm319_vm8, %v567_v13, %v569_v12  ;;  %v628_v26 = vsel %vm319_vm8, %v565_v41, %v567_v13 }
 0x1d8   : >> { %708 = vmatpush2.bf16.msra.mxu0 %v630_v21 }
 0x1d9   : >> { %709 = vmatprep.subr.bf16.mxu0 %v629_v23 }
 0x1da   : >> { %v561_v9 = vpop.permute.xlu1 %560  ;;  %v563_v24 = vpop.permute.xlu0 %562 }
 0x1db   : >> { %v627_v27 = vsel %vm319_vm8, %v561_v9, %v563_v24  ;;  %v626_v31 = vsel %vm319_vm8, %v559_v42, %v561_v9  ;;  %v1500_v42 = vld [vmem:[%s2033_s6 + $0x20] ss:$12 sps:$4 sm:$0xff]  }
 0x1dc   : >> { %710 = vmatpush2.bf16.msra.mxu0 %v628_v26 }
 0x1dd   : >> { %711 = vmatprep.subr.bf16.mxu0 %v627_v27 }
 0x1de   : >> { %v605_v28 = vpop.permute.xlu1 %604  ;;  %v603_v29 = vpop.permute.xlu0 %602 }
 0x1df   : >> { %v641_v32 = vsel %vm319_vm8, %v603_v29, %v605_v28  ;;  %v640_v33 = vsel %vm319_vm8, %v601_v54, %v603_v29 }
 0x1e0   : >> { %712 = vmatpush2.bf16.msra.mxu0 %v626_v31  ;;  %750 = vmatprep.subr.bf16.mxu1 %v641_v32 }
 0x1e1   : >> { %713 = vmatprep.subr.bf16.mxu0 %v625_v34  ;;  %751 = vmatpush1.bf16.msra.mxu1 %v640_v33 }
 0x1e2   : >> { %v599_v36 = vpop.permute.xlu1 %598  ;;  %v597_v53 = vpop.permute.xlu0 %596 }
 0x1e3   : >> { %v639_v46 = vsel %vm319_vm8, %v597_v53, %v599_v36 }
 0x1e4   : >> { %714 = vmatpush2.bf16.msra.mxu0 %v624_v45  ;;  %752 = vmatprep.subr.bf16.mxu1 %v639_v46 }
 0x1e5   : >> { %715 = vmatprep.subr.bf16.mxu0 %v623_v48 }
 0x1e6   : >> { %v595_v51 = vpop.permute.xlu1 %594  ;;  %v547_v49 = vpop.permute.xlu0 %546 }
 0x1e7   : >> { %v622_v50 = vsel %vm319_vm8, %v547_v49, %v549_v5  ;;  %v638_v52 = vsel %vm319_vm8, %v595_v51, %v597_v53  ;;  %vm869_vm8 = vcmask 15360  }
 0x1e8   : >> { %716 = vmatpush2.bf16.msra.mxu0 %v622_v50  ;;  %753 = vmatpush1.bf16.msra.mxu1 %v638_v52 }
 0x1ea   : >> { %v2207_v12 = vpop.permute.xlu1 %851  ;;  %v2209_v13 = vpop.permute.xlu0 %800 }
 0x1eb   : >> { %718 = vmatmul.mubr.bf16.vlgmr.msra.gmra.mxu0 %v1493_v55  ;;  %1325 = vmatmul.mubr.msk.bf16.vlgmr.msra.gmra.mxu1 %vm678_vm14, %v1496_v56 }
 0x1ec   : >> { %727 = vmatprep.mubr.bf16.mxu0 %v1497_v40  ;;  %780 = vmatprep.mubr.bf16.mxu1 %v1645_v30 }
 0x1ee   : >> { %v2211_v21 = vpop.permute.xlu1 %957  ;;  %v2213_v23 = vpop.permute.xlu0 %906 }
 0x1f3   : >> { %728 = vmatmul.mubr.bf16.gmra.mxu0 %v1499_v57  ;;  %1326 = vmatmul.mubr.msk.bf16.gmra.mxu1 %vm678_vm14, %v1500_v42 }
 0x2ab   : >> { %v719_v41 = vpop.f32.mrf.mxu0  ;;  %v772_v60 = vpop.f32.mrf.mxu1 }
 0x2ac   : >> { %v2119_v62 = vadd.f32 %v772_v60, %v719_v41 }
 0x2ad   : >> { %v721_v61 = vpop.f32.mrf.mxu0  ;;  %v774_v1 = vpop.f32.mrf.mxu1 }
 0x2ae   : >> { %853 = vrot.lane.b32.xlu0 %v2119_v62, %s1659_s7  ;;  %802 = vrot.lane.b32.xlu1 %v2119_v62, %s1649_s22  ;;  %v2129_v30 = vadd.f32 %v774_v1, %v721_v61 }
 0x2af   : >> { %v723_v63 = vpop.f32.mrf.mxu0  ;;  %v776_v35 = vpop.f32.mrf.mxu1 }
 0x2b0   : >> { %v2139_v54 = vadd.f32 %v776_v35, %v723_v63 }
 0x2b1   : >> { %v725_v2 = vpop.f32.mrf.mxu0  ;;  %v778_v22 = vpop.f32.mrf.mxu1 }
 0x2b2   : >> { %902 = vrot.lane.b32.xlu0 %v2119_v62, %s1647_s20  ;;  %953 = vrot.lane.b32.xlu1 %v2119_v62, %s1651_s24  ;;  %v2149_v25 = vadd.f32 %v778_v22, %v725_v2 }
 0x2b3   : >> { %v729_v37 = vpop.f32.mrf.mxu0  ;;  %v782_v5 = vpop.f32.mrf.mxu1 }
 0x2b4   : >> { %v2155_v58 = vadd.f32 %v782_v5, %v729_v37 }
 0x2b5   : >> { %v731_v44 = vpop.f32.mrf.mxu0  ;;  %v784_v6 = vpop.f32.mrf.mxu1 }
 0x2b6   : >> { %855 = vrot.lane.b32.xlu1 %v2129_v30, %s1659_s7  ;;  %804 = vrot.lane.b32.xlu0 %v2129_v30, %s1649_s22  ;;  %v2169_v59 = vadd.f32 %v784_v6, %v731_v44 }
 0x2b7   : >> { %v733_v38 = vpop.f32.mrf.mxu0  ;;  %v786_v8 = vpop.f32.mrf.mxu1 }
 0x2b8   : >> { %v2179_v47 = vadd.f32 %v786_v8, %v733_v38 }
 0x2b9   : >> { %v735_v39 = vpop.f32.mrf.mxu0  ;;  %v788_v14 = vpop.f32.mrf.mxu1 }
 0x2ba   : >> { %904 = vrot.lane.b32.xlu1 %v2129_v30, %s1647_s20  ;;  %955 = vrot.lane.b32.xlu0 %v2129_v30, %s1651_s24  ;;  %v2189_v43 = vadd.f32 %v788_v14, %v735_v39 }
 0x2be   : >> { %857 = vrot.lane.b32.xlu0 %v2139_v54, %s1659_s7  ;;  %806 = vrot.lane.b32.xlu1 %v2139_v54, %s1649_s22 }
 0x2c2   : >> { %959 = vrot.lane.b32.xlu0 %v2139_v54, %s1651_s24  ;;  %908 = vrot.lane.b32.xlu1 %v2139_v54, %s1647_s20 }
 0x2c6   : >> { %859 = vrot.lane.b32.xlu1 %v2149_v25, %s1659_s7  ;;  %808 = vrot.lane.b32.xlu0 %v2149_v25, %s1649_s22 }
 0x2ca   : >> { %961 = vrot.lane.b32.xlu1 %v2149_v25, %s1651_s24  ;;  %910 = vrot.lane.b32.xlu0 %v2149_v25, %s1647_s20 }
 0x2ce   : >> { %861 = vrot.lane.b32.xlu0 %v2155_v58, %s1659_s7  ;;  %810 = vrot.lane.b32.xlu1 %v2155_v58, %s1649_s22 }
 0x2d2   : >> { %963 = vrot.lane.b32.xlu0 %v2155_v58, %s1651_s24  ;;  %912 = vrot.lane.b32.xlu1 %v2155_v58, %s1647_s20 }
 0x2d6   : >> { %863 = vrot.lane.b32.xlu1 %v2169_v59, %s1659_s7  ;;  %812 = vrot.lane.b32.xlu0 %v2169_v59, %s1649_s22 }
 0x2da   : >> { %965 = vrot.lane.b32.xlu1 %v2169_v59, %s1651_s24  ;;  %914 = vrot.lane.b32.xlu0 %v2169_v59, %s1647_s20 }
 0x2de   : >> { %865 = vrot.lane.b32.xlu0 %v2179_v47, %s1659_s7  ;;  %814 = vrot.lane.b32.xlu1 %v2179_v47, %s1649_s22 }
 0x2e2   : >> { %967 = vrot.lane.b32.xlu0 %v2179_v47, %s1651_s24  ;;  %916 = vrot.lane.b32.xlu1 %v2179_v47, %s1647_s20 }
 0x2e6   : >> { %867 = vrot.lane.b32.xlu1 %v2189_v43, %s1659_s7  ;;  %816 = vrot.lane.b32.xlu0 %v2189_v43, %s1649_s22 }
 0x2ea   : >> { %1054 = vrot.lane.b32.xlu1 %v1658_v7, %s1660_s8  ;;  %918 = vrot.lane.b32.xlu0 %v2189_v43, %s1647_s20 }
 0x2ee   : >> { %969 = vrot.lane.b32.xlu1 %v2189_v43, %s1651_s24  ;;  %1012 = vrot.lane.b32.xlu0 %v1658_v7, %s1661_s10 }
 0x2f2   : >> { %1144 = vrot.lane.b32.xlu1 %v1658_v7, %s1655_s28  ;;  %1101 = vrot.lane.b32.xlu0 %v1658_v7, %s1652_s25 }
 0x320   : >> { %v803_v9 = vpop.permute.xlu1 %802  ;;  %v854_v24 = vpop.permute.xlu0 %853 }
 0x321   : >> { %v819_v26 = vsel %vm295_vm9, %v2209_v13, %v803_v9  ;;  %v870_v31 = vsel %vm869_vm8, %v2207_v12, %v854_v24 }
 0x322   : >> { %v835_v29 = vsel %vm174_vm0, %v819_v26, -inf  ;;  %v886_v53 = vsel %vm176_vm1, %v870_v31, -inf }
 0x323   : >> { %v843_v7 = vmax.f32 %v2119_v62, %v835_v29 }
 0x324   : >> { %v954_v27 = vpop.permute.xlu1 %953  ;;  %v903_v28 = vpop.permute.xlu0 %902 }
 0x325   : >> { %v894_v45 = vmax.f32 %v843_v7, %v886_v53 }
 0x328   : >> { %v856_v32 = vpop.permute.xlu1 %855  ;;  %v805_v33 = vpop.permute.xlu0 %804 }
 0x329   : >> { %v820_v34 = vsel %vm295_vm9, %v803_v9, %v805_v33  ;;  %v871_v51 = vsel %vm869_vm8, %v854_v24, %v856_v32 }
 0x32a   : >> { %v836_v36 = vsel %vm175_vm4, %v820_v34, -inf  ;;  %v887_v57 = vsel %vm177_vm5, %v871_v51, -inf }
 0x32b   : >> { %v844_v49 = vmax.f32 %v2129_v30, %v836_v36 }
 0x32c   : >> { %v905_v46 = vpop.permute.xlu1 %904  ;;  %v956_v48 = vpop.permute.xlu0 %955 }
 0x32d   : >> { %v921_v50 = vsel %vm283_vm10, %v903_v28, %v905_v46  ;;  %v972_v52 = vsel %vm360_vm11, %v954_v27, %v956_v48  ;;  %v922_v56 = vsel %vm283_vm10, %v905_v46, %v2213_v23  ;;  %v895_v62 = vmax.f32 %v844_v49, %v887_v57 }
 0x32e   : >> { %v937_v55 = vsel %vm178_vm2, %v921_v50, -inf  ;;  %v988_v42 = vsel %vm180_vm3, %v972_v52, -inf  ;;  %v938_v1 = vsel %vm179_vm6, %v922_v56, -inf  ;;  %v973_v22 = vsel %vm360_vm11, %v956_v48, %v2211_v21 }
 0x32f   : >> { %v945_v40 = vmax.f32 %v894_v45, %v937_v55  ;;  %v946_v2 = vmax.f32 %v895_v62, %v938_v1  ;;  %v989_v5 = vsel %vm181_vm7, %v973_v22, -inf }
 0x330   : >> { %v807_v41 = vpop.permute.xlu1 %806  ;;  %v858_v60 = vpop.permute.xlu0 %857 }
 0x331   : >> { %v2239_v61 = vmax.f32 %v945_v40, %v988_v42  ;;  %v821_v30 = vsel %vm295_vm9, %v2209_v13, %v807_v41  ;;  %v872_v6 = vsel %vm869_vm8, %v2207_v12, %v858_v60  ;;  %v2262_v39 = vmax.f32 %v946_v2, %v989_v5 }
 0x332   : >> { %v837_v37 = vsel %vm174_vm0, %v821_v30, -inf  ;;  %v888_v24 = vsel %vm176_vm1, %v872_v6, -inf }
 0x333   : >> { %1056 = vrot.lane.b32.xlu0 %v2239_v61, %s1660_s8  ;;  %1014 = vrot.lane.b32.xlu1 %v2239_v61, %s1661_s10  ;;  %v845_v44 = vmax.f32 %v2139_v54, %v837_v37 }
 0x334   : >> { %v909_v63 = vpop.permute.xlu1 %908  ;;  %v960_v35 = vpop.permute.xlu0 %959 }
 0x335   : >> { %v896_v54 = vmax.f32 %v845_v44, %v888_v24 }
 0x337   : >> { %1097 = vrot.lane.b32.xlu0 %v2239_v61, %s1652_s25  ;;  %1140 = vrot.lane.b32.xlu1 %v2239_v61, %s1655_s28 }
 0x338   : >> { %v860_v38 = vpop.permute.xlu1 %859  ;;  %v809_v8 = vpop.permute.xlu0 %808 }
 0x339   : >> { %v822_v14 = vsel %vm295_vm9, %v807_v41, %v809_v8  ;;  %v873_v28 = vsel %vm869_vm8, %v858_v60, %v860_v38 }
 0x33a   : >> { %v838_v9 = vsel %vm175_vm4, %v822_v14, -inf }
 0x33b   : >> { %1016 = vrot.lane.b32.xlu0 %v2262_v39, %s1661_s10  ;;  %1058 = vrot.lane.b32.xlu1 %v2262_v39, %s1660_s8  ;;  %v846_v29 = vmax.f32 %v2149_v25, %v838_v9  ;;  %v889_v25 = vsel %vm177_vm5, %v873_v28, -inf }
 0x33c   : >> { %v962_v26 = vpop.permute.xlu1 %961  ;;  %v911_v27 = vpop.permute.xlu0 %910 }
 0x33d   : >> { %v974_v7 = vsel %vm360_vm11, %v960_v35, %v962_v26  ;;  %v923_v31 = vsel %vm283_vm10, %v909_v63, %v911_v27  ;;  %v924_v33 = vsel %vm283_vm10, %v911_v27, %v2213_v23  ;;  %v897_v46 = vmax.f32 %v846_v29, %v889_v25 }
 0x33e   : >> { %v939_v32 = vsel %vm178_vm2, %v923_v31, -inf  ;;  %v990_v36 = vsel %vm180_vm3, %v974_v7, -inf  ;;  %v940_v51 = vsel %vm179_vm6, %v924_v33, -inf  ;;  %v975_v55 = vsel %vm360_vm11, %v962_v26, %v2211_v21 }
 0x33f   : >> { %v947_v34 = vmax.f32 %v896_v54, %v939_v32  ;;  %1142 = vrot.lane.b32.xlu0 %v2262_v39, %s1655_s28  ;;  %1099 = vrot.lane.b32.xlu1 %v2262_v39, %s1652_s25  ;;  %v948_v56 = vmax.f32 %v897_v46, %v940_v51  ;;  %v991_v57 = vsel %vm181_vm7, %v975_v55, -inf }
 0x340   : >> { %v811_v53 = vpop.permute.xlu1 %810  ;;  %v862_v45 = vpop.permute.xlu0 %861 }
 0x341   : >> { %v2289_v48 = vmax.f32 %v947_v34, %v990_v36  ;;  %v823_v49 = vsel %vm295_vm9, %v2209_v13, %v811_v53  ;;  %v874_v41 = vsel %vm869_vm8, %v2207_v12, %v862_v45  ;;  %v2312_v1 = vmax.f32 %v948_v56, %v991_v57 }
 0x342   : >> { %v839_v40 = vsel %vm174_vm0, %v823_v49, -inf  ;;  %v890_v35 = vsel %vm176_vm1, %v874_v41, -inf }
 0x343   : >> { %1060 = vrot.lane.b32.xlu0 %v2289_v48, %s1660_s8  ;;  %1018 = vrot.lane.b32.xlu1 %v2289_v48, %s1661_s10  ;;  %v847_v42 = vmax.f32 %v2155_v58, %v839_v40 }
 0x344   : >> { %v913_v50 = vpop.permute.xlu1 %912  ;;  %v964_v52 = vpop.permute.xlu0 %963 }
 0x345   : >> { %v898_v58 = vmax.f32 %v847_v42, %v890_v35 }
 0x347   : >> { %1146 = vrot.lane.b32.xlu0 %v2289_v48, %s1655_s28  ;;  %1103 = vrot.lane.b32.xlu1 %v2289_v48, %s1652_s25 }
 0x348   : >> { %v864_v60 = vpop.permute.xlu1 %863  ;;  %v813_v62 = vpop.permute.xlu0 %812 }
 0x349   : >> { %v824_v30 = vsel %vm295_vm9, %v811_v53, %v813_v62  ;;  %v875_v37 = vsel %vm869_vm8, %v862_v45, %v864_v60 }
 0x34a   : >> { %v840_v63 = vsel %vm175_vm4, %v824_v30, -inf }
 0x34b   : >> { %1020 = vrot.lane.b32.xlu0 %v2312_v1, %s1661_s10  ;;  %1062 = vrot.lane.b32.xlu1 %v2312_v1, %s1660_s8  ;;  %v848_v5 = vmax.f32 %v2169_v59, %v840_v63  ;;  %v891_v59 = vsel %vm177_vm5, %v875_v37, -inf }
 0x34c   : >> { %v966_v2 = vpop.permute.xlu1 %965  ;;  %v915_v22 = vpop.permute.xlu0 %914 }
 0x34d   : >> { %v976_v44 = vsel %vm360_vm11, %v964_v52, %v966_v2  ;;  %v925_v6 = vsel %vm283_vm10, %v913_v50, %v915_v22  ;;  %v926_v8 = vsel %vm283_vm10, %v915_v22, %v2213_v23  ;;  %v899_v26 = vmax.f32 %v848_v5, %v891_v59 }
 0x34e   : >> { %v941_v38 = vsel %vm178_vm2, %v925_v6, -inf  ;;  %v992_v9 = vsel %vm180_vm3, %v976_v44, -inf  ;;  %v942_v28 = vsel %vm179_vm6, %v926_v8, -inf  ;;  %v977_v31 = vsel %vm360_vm11, %v966_v2, %v2211_v21 }
 0x34f   : >> { %v949_v14 = vmax.f32 %v898_v58, %v941_v38  ;;  %1105 = vrot.lane.b32.xlu0 %v2312_v1, %s1652_s25  ;;  %1148 = vrot.lane.b32.xlu1 %v2312_v1, %s1655_s28  ;;  %v950_v32 = vmax.f32 %v899_v26, %v942_v28  ;;  %v993_v34 = vsel %vm181_vm7, %v977_v31, -inf }
 0x350   : >> { %v815_v24 = vpop.permute.xlu1 %814  ;;  %v866_v54 = vpop.permute.xlu0 %865 }
 0x351   : >> { %v2339_v27 = vmax.f32 %v949_v14, %v992_v9  ;;  %v825_v33 = vsel %vm295_vm9, %v2209_v13, %v815_v24  ;;  %v2359_v45 = vmax.f32 %v950_v32, %v993_v34  ;;  %v876_v49 = vsel %vm869_vm8, %v2207_v12, %v866_v54 }
 0x352   : >> { %v841_v25 = vsel %vm174_vm0, %v825_v33, -inf }
 0x353   : >> { %1064 = vrot.lane.b32.xlu0 %v2339_v27, %s1660_s8  ;;  %1022 = vrot.lane.b32.xlu1 %v2339_v27, %s1661_s10  ;;  %v849_v51 = vmax.f32 %v2179_v47, %v841_v25  ;;  %v892_v47 = vsel %vm176_vm1, %v876_v49, -inf }
 0x354   : >> { %v917_v29 = vpop.permute.xlu1 %916  ;;  %v968_v7 = vpop.permute.xlu0 %967 }
 0x355   : >> { %v900_v57 = vmax.f32 %v849_v51, %v892_v47 }
 0x357   : >> { %1150 = vrot.lane.b32.xlu0 %v2339_v27, %s1655_s28  ;;  %1107 = vrot.lane.b32.xlu1 %v2339_v27, %s1652_s25 }
 0x358   : >> { %v868_v36 = vpop.permute.xlu1 %867  ;;  %v817_v53 = vpop.permute.xlu0 %816 }
 0x359   : >> { %v826_v46 = vsel %vm295_vm9, %v815_v24, %v817_v53  ;;  %v877_v55 = vsel %vm869_vm8, %v866_v54, %v868_v36 }
 0x35a   : >> { %v842_v13 = vsel %vm175_vm4, %v826_v46, -inf }
 0x35b   : >> { %1024 = vrot.lane.b32.xlu0 %v2359_v45, %s1661_s10  ;;  %1066 = vrot.lane.b32.xlu1 %v2359_v45, %s1660_s8  ;;  %v850_v56 = vmax.f32 %v2189_v43, %v842_v13  ;;  %v893_v43 = vsel %vm177_vm5, %v877_v55, -inf }
 0x35c   : >> { %v2371_v50 = vpop.permute.xlu1 %1054  ;;  %v919_v52 = vpop.permute.xlu0 %918 }
 0x35d   : >> { %v927_v40 = vsel %vm283_vm10, %v917_v29, %v919_v52  ;;  %v928_v42 = vsel %vm283_vm10, %v919_v52, %v2213_v23  ;;  %v901_v60 = vmax.f32 %v850_v56, %v893_v43  ;;  %vm1072_vm10 = vcmask 130048  }
 0x35e   : >> { %v943_v12 = vsel %vm178_vm2, %v927_v40, -inf  ;;  %v944_v23 = vsel %vm179_vm6, %v928_v42, -inf }
 0x35f   : >> { %1109 = vrot.lane.b32.xlu0 %v2359_v45, %s1652_s25  ;;  %1152 = vrot.lane.b32.xlu1 %v2359_v45, %s1655_s28  ;;  %v951_v62 = vmax.f32 %v900_v57, %v943_v12  ;;  %v952_v22 = vmax.f32 %v901_v60, %v944_v23 }
 0x360   : >> { %v970_v41 = vpop.permute.xlu1 %969 }
 0x361   : >> { %v978_v30 = vsel %vm360_vm11, %v968_v7, %v970_v41  ;;  %v979_v63 = vsel %vm360_vm11, %v970_v41, %v2211_v21  ;;  %v2417_v21 = vpop.permute.xlu0 %1012 }
 0x362   : >> { %v994_v35 = vsel %vm180_vm3, %v978_v30, -inf  ;;  %v995_v2 = vsel %vm181_vm7, %v979_v63, -inf }
 0x363   : >> { %v2395_v58 = vmax.f32 %v951_v62, %v994_v35  ;;  %v2403_v37 = vmax.f32 %v952_v22, %v995_v2 }
 0x364   : >> { %v2419_v5 = vpop.permute.xlu1 %1144 }
 0x365   : >> { %1068 = vrot.lane.b32.xlu0 %v2395_v58, %s1660_s8  ;;  %1026 = vrot.lane.b32.xlu1 %v2395_v58, %s1661_s10  ;;  %v2421_v44 = vpop.permute.xlu0 %1101 }
 0x369   : >> { %1028 = vrot.lane.b32.xlu0 %v2403_v37, %s1661_s10  ;;  %1111 = vrot.lane.b32.xlu1 %v2395_v58, %s1652_s25 }
 0x36d   : >> { %1113 = vrot.lane.b32.xlu0 %v2403_v37, %s1652_s25  ;;  %1070 = vrot.lane.b32.xlu1 %v2403_v37, %s1660_s8 }
 0x371   : >> { %1154 = vrot.lane.b32.xlu0 %v2395_v58, %s1655_s28  ;;  %1156 = vrot.lane.b32.xlu1 %v2403_v37, %s1655_s28 }
 0x3a5   : >> { %v1015_v6 = vpop.permute.xlu1 %1014  ;;  %v1057_v38 = vpop.permute.xlu0 %1056 }
 0x3a6   : >> { %v1030_v59 = vsel %vm678_vm14, %v2417_v21, %v1015_v6  ;;  %v1073_v29 = vsel %vm1072_vm10, %v2371_v50, %v1057_v38 }
 0x3a7   : >> { %v1046_v9 = vmax.f32 %v2239_v61, %v1030_v59 }
 0x3a9   : >> { %v1141_v8 = vpop.permute.xlu1 %1140  ;;  %v1098_v14 = vpop.permute.xlu0 %1097  ;;  %v1089_v31 = vmax.f32 %v1046_v9, %v1073_v29 }
 0x3ad   : >> { %v1059_v24 = vpop.permute.xlu1 %1058  ;;  %v1017_v54 = vpop.permute.xlu0 %1016 }
 0x3ae   : >> { %v1031_v26 = vsel %vm678_vm14, %v1015_v6, %v1017_v54  ;;  %v1074_v7 = vsel %vm1072_vm10, %v1057_v38, %v1059_v24 }
 0x3af   : >> { %v1047_v28 = vmax.f32 %v2262_v39, %v1031_v26 }
 0x3b1   : >> { %v1100_v32 = vpop.permute.xlu1 %1099  ;;  %v1090_v33 = vmax.f32 %v1047_v28, %v1074_v7  ;;  %v1143_v34 = vpop.permute.xlu0 %1142 }
 0x3b2   : >> { %v1116_v25 = vsel %vm379_vm13, %v1098_v14, %v1100_v32  ;;  %v1117_v61 = vsel %vm379_vm13, %v1100_v32, %v2421_v44  ;;  %v1159_v46 = vsel %vm427_vm12, %v1141_v8, %v1143_v34  ;;  %v1160_v39 = vsel %vm427_vm12, %v1143_v34, %v2419_v5 }
 0x3b3   : >> { %v1132_v36 = vmax.f32 %v1089_v31, %v1116_v25  ;;  %v1133_v53 = vmax.f32 %v1090_v33, %v1117_v61 }
 0x3b5   : >> { %v2437_v28 = vmax.f32 %v1132_v36, %v1159_v46   ;;  %v2439_v13 = vmax.f32 %v1133_v53, %v1160_v39   ;;  %v1019_v51 = vpop.permute.xlu1 %1018  ;;  %v1061_v49 = vpop.permute.xlu0 %1060 }
 0x3b6   : >> { %v1032_v47 = vsel %vm678_vm14, %v2417_v21, %v1019_v51 }
 0x3b7   : >> { %v2443_v10 = vadd.f32 %v1639_v10, %v2437_v28   ;;  %v2447_v11 = vadd.f32 %v1635_v11, %v2439_v13   ;;  %v1048_v12 = vmax.f32 %v2289_v48, %v1032_v47 }
 0x3b9   : >> { %v2574_v52 = vmov %v2443_v10  ;;  %v2575_v55 = vmov %v2447_v11  ;;  %v1104_v56 = vpop.permute.xlu1 %1103  ;;  %v1147_v40 = vpop.permute.xlu0 %1146  ;;  %v1075_v10 = vsel %vm1072_vm10, %v2371_v50, %v1061_v49 }
 0x3ba   : >> { %v1091_v62 = vmax.f32 %v1048_v12, %v1075_v10  ;;  %1191 = vst [vmem:[%s1694_s17] sm:$0xff] (%p2502_p4), %v2574_v52  ;;  %1192 = vst [vmem:[%s1694_s17 + $0x8] sm:$0xff] (%p2502_p4), %v2575_v55 }
 0x3bd   : >> { %v1063_v57 = vpop.permute.xlu1 %1062  ;;  %v1021_v42 = vpop.permute.xlu0 %1020 }
 0x3be   : >> { %v1033_v43 = vsel %vm678_vm14, %v1019_v51, %v1021_v42  ;;  %v1076_v60 = vsel %vm1072_vm10, %v1061_v49, %v1063_v57 }
 0x3bf   : >> { %v1049_v41 = vmax.f32 %v2312_v1, %v1033_v43 }
 0x3c1   : >> { %v1149_v11 = vpop.permute.xlu1 %1148  ;;  %v1092_v30 = vmax.f32 %v1049_v41, %v1076_v60  ;;  %v1106_v63 = vpop.permute.xlu0 %1105 }
 0x3c2   : >> { %v1118_v23 = vsel %vm379_vm13, %v1104_v56, %v1106_v63  ;;  %v1119_v48 = vsel %vm379_vm13, %v1106_v63, %v2421_v44  ;;  %v1161_v22 = vsel %vm427_vm12, %v1147_v40, %v1149_v11  ;;  %v1162_v1 = vsel %vm427_vm12, %v1149_v11, %v2419_v5 }
 0x3c3   : >> { %v1134_v35 = vmax.f32 %v1091_v62, %v1118_v23  ;;  %v1135_v2 = vmax.f32 %v1092_v30, %v1119_v48 }
 0x3c5   : >> { %v1177_v26 = vmax.f32 %v1134_v35, %v1161_v22   ;;  %v1178_v25 = vmax.f32 %v1135_v2, %v1162_v1   ;;  %v1023_v6 = vpop.permute.xlu1 %1022  ;;  %v1065_v38 = vpop.permute.xlu0 %1064 }
 0x3c6   : >> { %v1034_v24 = vsel %vm678_vm14, %v2417_v21, %v1023_v6  ;;  %v1077_v33 = vsel %vm1072_vm10, %v2371_v50, %v1065_v38 }
 0x3c7   : >> { %v2464_v15 = vadd.f32 %v1631_v15, %v1177_v26   ;;  %v2467_v16 = vadd.f32 %v1627_v16, %v1178_v25   ;;  %v1050_v54 = vmax.f32 %v2339_v27, %v1034_v24 }
 0x3c9   : >> { %v2576_v8 = vmov %v2464_v15  ;;  %v2577_v14 = vmov %v2467_v16  ;;  %v1108_v59 = vpop.permute.xlu1 %1107  ;;  %v1151_v9 = vpop.permute.xlu0 %1150  ;;  %v1093_v34 = vmax.f32 %v1050_v54, %v1077_v33 }
 0x3ca   : > { %1193 = vst [vmem:[%s1694_s17 + $0x10] sm:$0xff] (%p2502_p4), %v2576_v8  ;;  %1194 = vst [vmem:[%s1694_s17 + $0x18] sm:$0xff] (%p2502_p4), %v2577_v14 }
 0x3cd   : >> { %v1067_v29 = vpop.permute.xlu1 %1066  ;;  %v1025_v7 = vpop.permute.xlu0 %1024 }
 0x3ce   : >> { %v1035_v31 = vsel %vm678_vm14, %v1023_v6, %v1025_v7  ;;  %v1078_v15 = vsel %vm1072_vm10, %v1065_v38, %v1067_v29 }
 0x3cf   : >> { %v1051_v32 = vmax.f32 %v2359_v45, %v1035_v31 }
 0x3d1   : >> { %v1153_v16 = vpop.permute.xlu1 %1152  ;;  %v1094_v61 = vmax.f32 %v1051_v32, %v1078_v15  ;;  %v1110_v36 = vpop.permute.xlu0 %1109  ;;  %v2585_v15 = vmov %v2576_v8 }
 0x3d2   : >> { %v1120_v53 = vsel %vm379_vm13, %v1108_v59, %v1110_v36  ;;  %v1121_v27 = vsel %vm379_vm13, %v1110_v36, %v2421_v44  ;;  %v1163_v51 = vsel %vm427_vm12, %v1151_v9, %v1153_v16  ;;  %v1164_v45 = vsel %vm427_vm12, %v1153_v16, %v2419_v5 }
 0x3d3   : >> { %v1136_v46 = vmax.f32 %v1093_v34, %v1120_v53  ;;  %v1137_v39 = vmax.f32 %v1094_v61, %v1121_v27  ;;  %v2579_v27 = vmov %v2439_v13  ;;  %v2584_v16 = vmov %v2577_v14 }
 0x3d5   : >> { %v1179_v24 = vmax.f32 %v1136_v46, %v1163_v51   ;;  %v1180_v23 = vmax.f32 %v1137_v39, %v1164_v45  }
 0x3d7   : >> { %v1187_v49 = vadd.f32 %v1623_v17, %v1179_v24   ;;  %v1188_v56 = vadd.f32 %v1619_v18, %v1180_v23   ;;  %v1027_v40 = vpop.permute.xlu1 %1026  ;;  %v1069_v47 = vpop.permute.xlu0 %1068 }
 0x3d8   : >> { %v1036_v12 = vsel %vm678_vm14, %v2417_v21, %v1027_v40  ;;  %v1079_v17 = vsel %vm1072_vm10, %v2371_v50, %v1069_v47 }
 0x3d9   : >> { %v1052_v41 = vmax.f32 %v2395_v58, %v1036_v12  ;;  %1195 = vst [vmem:[%s1694_s17 + $0x20] sm:$0xff] (%p2502_p4), %v1187_v49  ;;  %1196 = vst [vmem:[%s1694_s17 + $0x28] sm:$0xff] (%p2502_p4), %v1188_v56 }
 0x3db   : >> { %v1112_v57 = vpop.permute.xlu1 %1111  ;;  %v1029_v42 = vpop.permute.xlu0 %1028  ;;  %v1095_v30 = vmax.f32 %v1052_v41, %v1079_v17  ;;  %v2583_v17 = vmov %v1187_v49 }
 0x3dc   : >> { %v1037_v43 = vsel %vm678_vm14, %v1027_v40, %v1029_v42 }
 0x3dd   : >> { %v1053_v10 = vmax.f32 %v2403_v37, %v1037_v43 }
 0x3df   : >> { %v1071_v60 = vpop.permute.xlu1 %1070  ;;  %v1114_v62 = vpop.permute.xlu0 %1113 }
 0x3e0   : >> { %v1080_v18 = vsel %vm1072_vm10, %v1069_v47, %v1071_v60  ;;  %v1122_v11 = vsel %vm379_vm13, %v1112_v57, %v1114_v62  ;;  %v1123_v21 = vsel %vm379_vm13, %v1114_v62, %v2421_v44 }
 0x3e1   : >> { %v1096_v63 = vmax.f32 %v1053_v10, %v1080_v18  ;;  %v1138_v48 = vmax.f32 %v1095_v30, %v1122_v11  ;;  %v2582_v18 = vmov %v1188_v56  ;;  %v2586_v11 = vmov %v2575_v55 }
 0x3e2   : >> { %v2587_v10 = vmov %v2574_v52 }
 0x3e3   : >> { %v1139_v35 = vmax.f32 %v1096_v63, %v1123_v21  ;;  %v1157_v2 = vpop.permute.xlu1 %1156  ;;  %v1155_v58 = vpop.permute.xlu0 %1154 }
 0x3e4   : >> { %v1166_v37 = vsel %vm427_vm12, %v1157_v2, %v2419_v5  ;;  %v1165_v22 = vsel %vm427_vm12, %v1155_v58, %v1157_v2 }
 0x3e5   : >> { %v1182_v21 = vmax.f32 %v1139_v35, %v1166_v37   ;;  %v1181_v22 = vmax.f32 %v1138_v48, %v1165_v22   ;;  %202 = sbr.rel (!%p2502_p4) target bundleno = 22 (0x16), region = 66 }
 0x3e7   : >> { %v1190_v50 = vadd.f32 %v1611_v20, %v1182_v21   ;;  %v1189_v1 = vadd.f32 %v1615_v19, %v1181_v22  }
 0x3e9   : >> { %v2580_v20 = vmov %v1190_v50  ;;  %v2581_v19 = vmov %v1189_v1  ;;  %1197 = vst [vmem:[%s1694_s17 + $0x30] sm:$0xff] (%p2502_p4), %v1189_v1  ;;  %1198 = vst [vmem:[%s1694_s17 + $0x38] sm:$0xff] (%p2502_p4), %v1190_v50 }
 0x3ea PF: > { %s12_s9 = sadd.s32 1, %s1575_s9  }
 0x3eb   : > { %p9_p5 = scmp.ge.s32.totalorder %s12_s9, 4  }
 0x3ed   :  { %11 = sbr.rel (!%p9_p5) target bundleno = 1 (0x1), region = 77 }

</bundles_post_ra>
